<compile_context>
chip_gen: v7x
topology: tpu7x:2x2x1
jax: 0.10.0
libtpu: 0.0.40
codegen_flags: <defaults>
</compile_context>

<pallas_src>
import math

import numpy as np
import jax
import jax.numpy as jnp
from jax.experimental import pallas as pl
from jax.experimental.pallas import tpu as pltpu


LEVELS = [8, 5, 5, 5]     # codebook_dim D = 4, codebook_size = 1000
NUM_CODEBOOKS = 1
SCALE = 1.0


def _round_up(x, m):
    return ((x + m - 1) // m) * m


def _make_fsq_kernel(scale, skip_tanh=False, alpha=0.001):
    """Only scalar Python literals are closed over; arrays come in as refs."""

    def kernel(const_ref, z_ref, codes_ref, prod_ref):
        # z_ref: (tm, L) in the caller's dtype, lane l holds channel l % D.
        z = z_ref[...].astype(jnp.float32)
        if skip_tanh:
            zs = z * (1.0 / scale)
            z = ((1.0 - alpha) * jnp.clip(zs, -1.0, 1.0) + alpha * zs) * scale
        else:
            z = jnp.tanh(z)

        half_l = const_ref[0:1, :]       # (1, L) lane-periodic half_l[l % D]
        inv_half_l = const_ref[1:2, :]   # (1, L)
        basis = const_ref[2:3, :]        # (1, L), exact small integers

        # _scale_and_shift (divide -> multiply by inverse) + round_ste forward
        li = jnp.round((z + scale) * inv_half_l)            # level indices, f32
        # _scale_and_shift_inverse
        codes_ref[...] = (li * half_l - scale).astype(codes_ref.dtype)
        # _codes_to_indices: per-channel contribution; summed over each group
        # of D consecutive lanes outside the kernel (exact: products <= 800).
        prod_ref[...] = (li * basis).astype(jnp.int32)

    return kernel


def dithered_fsq_forward(z, levels=LEVELS, num_codebooks=NUM_CODEBOOKS,
                         scale=SCALE, skip_tanh=False):
    """z: (B, N, num_codebooks * len(levels)) -> (codes, indices)."""
    B, N, dim = z.shape
    D = len(levels)
    C = num_codebooks
    assert dim == C * D, f"expected last dim {C * D}, got {dim}"
    orig_dtype = z.dtype
    rows = B * N * C
    total = rows * D

    # --- choose a lane-dense (M, L) layout; L multiple of 128 and of D ------
    unit = (D * 128) // math.gcd(D, 128)        # lcm(D, 128); 128 for D=4
    L = None
    for cand in (4 * unit, 2 * unit, unit):
        if total % cand == 0:
            L = cand
            break
    if L is None:
        L = unit
    total_p = _round_up(total, L)

    zf = z.reshape(-1)                           # free contiguous reshape
    if total_p != total:
        # TODO(synk): only hit when B*N*C*D isn't a multiple of 128; costs one
        # extra copy of the input (review item: keep padding to the minimum).
        zf = jnp.pad(zf, (0, total_p - total))
    M = total_p // L
    z2 = zf.reshape(M, L)

    # --- block rows: multiple of 8 (or == M), ~1 MiB input block, and aim for
    # --- >= ~8 grid steps so v7x's two TensorCores both get work ------------
    if M <= 8:
        tm = M
    else:
        tm_cap = max(8, ((1 << 20) // (L * 4) // 8) * 8)      # ~1 MiB f32 block
        tm = min(tm_cap, _round_up(pl.cdiv(M, 8), 8))
    grid = (pl.cdiv(M, tm),)

    # --- lane-periodic per-channel constants, packed into one (3, L) input --
    levels_f = np.asarray(levels, dtype=np.float64)
    half_l = scale * 2.0 / (levels_f - 1.0)
    inv_half_l = (levels_f - 1.0) / (2.0 * scale)
    basis = np.cumprod([1] + list(levels[:-1])).astype(np.float64)
    reps = L // D
    const = jnp.asarray(np.stack([np.tile(half_l, reps),
                                  np.tile(inv_half_l, reps),
                                  np.tile(basis, reps)]).astype(np.float32))

    kernel = _make_fsq_kernel(scale, skip_tanh=skip_tanh)
    itemsize = np.dtype(orig_dtype).itemsize
    cost = pl.CostEstimate(flops=6 * total_p, transcendentals=total_p,
                           bytes_accessed=total_p * (2 * itemsize + 4))

    codes2, prods2 = pl.pallas_call(
        kernel,
        out_shape=(
            jax.ShapeDtypeStruct((M, L), orig_dtype),   # codes (same layout)
            jax.ShapeDtypeStruct((M, L), jnp.int32),    # li * basis per lane
        ),
        grid=grid,
        in_specs=[
            pl.BlockSpec((3, L), lambda i: (0, 0)),     # packed constants
            pl.BlockSpec((tm, L), lambda i: (i, 0)),    # z slab (lane-dense)
        ],
        out_specs=(
            pl.BlockSpec((tm, L), lambda i: (i, 0)),
            pl.BlockSpec((tm, L), lambda i: (i, 0)),
        ),
        compiler_params=pltpu.CompilerParams(
            dimension_semantics=("parallel",)),
        cost_estimate=cost,
    )(const, z2)

    # Free contiguous reshapes + one tiny reduce over groups of D lanes.
    codes = codes2.reshape(-1)[:total].reshape(B, N, dim)
    indices = prods2.reshape(-1, D)[:rows].sum(axis=-1).reshape(B, N, C)
    return codes, indices


def _reference_fsq(z, levels=LEVELS, num_codebooks=NUM_CODEBOOKS, scale=SCALE):
    """Pure-JAX reference mirroring the PyTorch eval forward (formulation-
    matched: multiply-by-inverse instead of divide, float32 math)."""
    B, N, dim = z.shape
    D = len(levels)
    zc = z.reshape(B, N, num_codebooks, D).astype(jnp.float32)
    levels_a = jnp.asarray(levels, dtype=jnp.float32)
    half_l = scale * 2.0 / (levels_a - 1.0)
    inv_half_l = (levels_a - 1.0) / (2.0 * scale)
    basis = jnp.asarray(np.cumprod([1] + list(levels[:-1])).astype(np.float32))
    zt = jnp.tanh(zc)
    li = jnp.round((zt + scale) * inv_half_l)
    codes = li * half_l - scale
    idx = jnp.sum(li * basis, axis=-1).astype(jnp.int32)
    return codes.reshape(B, N, dim).astype(z.dtype), idx


if __name__ == "__main__":
    key = jax.random.PRNGKey(0)
    B, N = 2, 16
    dim = NUM_CODEBOOKS * len(LEVELS)          # 4
    x = jax.random.normal(key, (B, N, dim), dtype=jnp.float32)

    codes, indices = dithered_fsq_forward(x)
    codes, indices = jax.block_until_ready((codes, indices))

    ref_codes, ref_idx = _reference_fsq(x)
    assert codes.shape == (B, N, dim) and codes.dtype == x.dtype
    assert indices.shape == (B, N, NUM_CODEBOOKS)
    np.testing.assert_allclose(np.asarray(codes), np.asarray(ref_codes),
                               rtol=1e-6, atol=1e-6)
    np.testing.assert_array_equal(np.asarray(indices), np.asarray(ref_idx))

    print("KERNEL_OK")
</pallas_src>

<mosaic_0001>
module attributes {stable_mosaic.version = 11 : i64} {
  func.func @kernel(%arg0: i32, %arg1: memref<3x128xf32, #tpu.memory_space<vmem>>, %arg2: memref<1x128xf32, #tpu.memory_space<vmem>>, %arg3: memref<1x128xf32, #tpu.memory_space<vmem>>, %arg4: memref<1x128xi32, #tpu.memory_space<vmem>>) attributes {dimension_semantics = [#tpu.dimension_semantics<parallel>], iteration_bounds = array<i64: 1>, scalar_prefetch = 0 : i64, scratch_operands = 0 : i64, tpu.core_type = #tpu.core_type<tc>, window_params = [{pipeline_mode = #tpu.pipeline_mode<synchronous>, transform_indices = @transform_0, window_bounds = array<i64: 3, 128>}, {transform_indices = @transform_1, window_bounds = array<i64: 1, 128>}, {transform_indices = @transform_2, window_bounds = array<i64: 1, 128>}, {transform_indices = @transform_3, window_bounds = array<i64: 1, 128>}]} {
    %c0 = arith.constant 0 : index
    %c0_0 = arith.constant 0 : index
    %0 = vector.load %arg2[%c0, %c0_0] : memref<1x128xf32, #tpu.memory_space<vmem>>, vector<1x128xf32>
    %1 = math.tanh %0 : vector<1x128xf32>
    %c0_1 = arith.constant 0 : index
    %c0_2 = arith.constant 0 : index
    %2 = vector.load %arg1[%c0_1, %c0_2] : memref<3x128xf32, #tpu.memory_space<vmem>>, vector<1x128xf32>
    %c1 = arith.constant 1 : index
    %c0_3 = arith.constant 0 : index
    %3 = vector.load %arg1[%c1, %c0_3] : memref<3x128xf32, #tpu.memory_space<vmem>>, vector<1x128xf32>
    %c2 = arith.constant 2 : index
    %c0_4 = arith.constant 0 : index
    %4 = vector.load %arg1[%c2, %c0_4] : memref<3x128xf32, #tpu.memory_space<vmem>>, vector<1x128xf32>
    %cst = arith.constant 1.000000e+00 : f32
    %5 = vector.broadcast %cst : f32 to vector<1x128xf32>
    %6 = arith.addf %1, %5 : vector<1x128xf32>
    %7 = arith.mulf %6, %3 : vector<1x128xf32>
    %8 = math.roundeven %7 : vector<1x128xf32>
    %9 = arith.mulf %8, %2 : vector<1x128xf32>
    %cst_5 = arith.constant 1.000000e+00 : f32
    %10 = vector.broadcast %cst_5 : f32 to vector<1x128xf32>
    %11 = arith.subf %9, %10 : vector<1x128xf32>
    %c0_6 = arith.constant 0 : index
    %c0_7 = arith.constant 0 : index
    %12 = vector.load %arg3[%c0_6, %c0_7] : memref<1x128xf32, #tpu.memory_space<vmem>>, vector<1x128xf32>
    tpu.vector_store %arg3[%c0_6, %c0_7], %11 {strides = array<i32>} : memref<1x128xf32, #tpu.memory_space<vmem>>, vector<1x128xf32>,
    %13 = arith.mulf %8, %4 : vector<1x128xf32>
    %14 = arith.fptosi %13 : vector<1x128xf32> to vector<1x128xi32>
    %c0_8 = arith.constant 0 : index
    %c0_9 = arith.constant 0 : index
    %15 = vector.load %arg4[%c0_8, %c0_9] : memref<1x128xi32, #tpu.memory_space<vmem>>, vector<1x128xi32>
    tpu.vector_store %arg4[%c0_8, %c0_9], %14 {strides = array<i32>} : memref<1x128xi32, #tpu.memory_space<vmem>>, vector<1x128xi32>,
    return
  }
  func.func @transform_0(%arg0: i32) -> (i32, i32) {
    %c0_i32 = arith.constant 0 : i32
    %c0_i32_0 = arith.constant 0 : i32
    %c0_i32_1 = arith.constant 0 : i32
    return %c0_i32, %c0_i32_0 : i32, i32
  }
  func.func @transform_1(%arg0: i32) -> (i32, i32) {
    %c0_i32 = arith.constant 0 : i32
    %c0_i32_0 = arith.constant 0 : i32
    return %arg0, %c0_i32 : i32, i32
  }
  func.func @transform_2(%arg0: i32) -> (i32, i32) {
    %c0_i32 = arith.constant 0 : i32
    %c0_i32_0 = arith.constant 0 : i32
    return %arg0, %c0_i32 : i32, i32
  }
  func.func @transform_3(%arg0: i32) -> (i32, i32) {
    %c0_i32 = arith.constant 0 : i32
    %c0_i32_0 = arith.constant 0 : i32
    return %arg0, %c0_i32 : i32, i32
  }
}

</mosaic_0001>

<bundles_post_ra>
// kernel: tpu_custom_call.1
= control target key start
LH: loop header
LB: loop body
LE: loop exit
PB: predicated region body
PF: predicated region fallthrough
CT: control target
= control target key end

     0   :  { %9 = vsyncpa [#allocation3], 0  ;;  %s221_s0 = inlined_call_operand.hbm [shape: f32[3,128], index: 0, kind: input, shape index: {}]   ;;  %s222_s1 = inlined_call_operand.vmem [shape: f32[1,128], index: 1, kind: input, shape index: {}]   ;;  %s223_s2 = inlined_call_operand.hbm [shape: f32[1,128], index: 2, kind: output, shape index: {0}]   ;;  %s224_s3 = inlined_call_operand.hbm [shape: s32[1,128], index: 3, kind: output, shape index: {1}]  }
   0x1   :  { %10 = vsyncpa [#allocation4], 0 }
   0x2   :  { %11 = vsyncpa [#allocation7], 0  ;;  %s151_s12 = smov [#allocation2]   ;;  %s79_s16 = scalar_lea.hbm %s221_s0, 64 }
   0x3   :  { %s18_s13 = sshll.u32 %s151_s12, 4  ;;  %p80_p0 = scmp.ne.s32.totalorder %s221_s0, %s79_s16  ;;  %s19_s13 = int_to_ptr.vmem [resolvable:$true] %s18_s13 }
   0x4   :  { %p83_p1 = scmp.lt.u32.totalorder %s79_s16, %s221_s0 }
   0x6   :  { %p85_p2 = pnand %p83_p1, %p80_p0 }
   0x8   :  { %88 = shalt.err (!%p85_p2)
}
   0x9   :  { %s89_s21 = scalar_lea.vmem %s19_s13, 64  ;;  %p94_p4 = scmp.lt.s32.totalorder %s19_s13, %s19_s13 }
   0xa   :  { %p90_p3 = scmp.ne.s32.totalorder %s19_s13, %s89_s21  ;;  %p95_p5 = scmp.lt.s32.totalorder %s89_s21, %s89_s21 }
   0xc   :  { %p96_p6 = por %p95_p5, %p94_p4 }
   0xe   :  { %p97_p7 = pnand %p96_p6, %p90_p3 }
  0x10   :  { %100 = shalt.err (!%p97_p7)
}
  0x11   :  { %21 = dma.hbm_to_vmem [thread:$0]  %s221_s0, 64, %s19_s13, [#allocation3]  }
  0x12   :  { %145 = dma.done.wait [#allocation3], 64  }
  0x13   :  { %146 = vsyncadd [#allocation3], 4294967232  ;;  %v27_v0 = vld [vmem:[%s222_s1] sm:$0x1]  ;;  %v30_v2 = vld [vmem:[#allocation2 + $0x1] sm:$0x1] }
  0x14   :  { %77 = vtanh.f32 %v27_v0  ;;  %v29_v5 = vld [vmem:[#allocation2] sm:$0x1]  ;;  %v31_v6 = vld [vmem:[#allocation2 + $0x2] sm:$0x1]  ;;  %s152_s26 = smov [#allocation5]   ;;  %s153_s28 = smov [#allocation6]  }
  0x15   :  { %s47_s27 = sshll.u32 %s152_s26, 4  ;;  %s57_s0 = sshll.u32 %s153_s28, 4  ;;  %s48_s27 = int_to_ptr.vmem [resolvable:$true] %s47_s27  ;;  %s189_s0 = int_to_ptr.vmem [resolvable:$true] %s57_s0 }
  0x16   :  { %s101_s1 = scalar_lea.vmem %s48_s27, 16  ;;  %s105_s29 = scalar_lea.vmem %s48_s27, 32 }
  0x17   :  { %p102_p8 = scmp.ne.s32.totalorder %s48_s27, %s101_s1  ;;  %p106_p9 = scmp.lt.s32.totalorder %s48_s27, %s48_s27 }
  0x18   :  { %p107_p10 = scmp.lt.s32.totalorder %s105_s29, %s101_s1 }
  0x1a   :  { %p108_p11 = por %p107_p10, %p106_p9 }
  0x1c   :  { %p109_p12 = pnand %p108_p11, %p102_p8 }
  0x1e   :  { %v78_v1 = vpop.eup %77 }
  0x1f   :  { %v32_v3 = vadd.f32 1.0, %v78_v1 }
  0x21   :  { %v33_v4 = vmul.f32 %v32_v3, %v30_v2 }
  0x23   :  { %v71_v7 = vround.rtne.f32 %v33_v4 }
  0x25   :  { %v35_v8 = vmul.f32 %v71_v7, %v29_v5  ;;  %v38_v9 = vmul.f32 %v71_v7, %v31_v6 }
  0x27   :  { %v70_v10 = vadd.f32 -1.0, %v35_v8  ;;  %v72_v11 = vtrunc.f32 %v38_v9 }
  0x29   :  { %37 = vst [vmem:[#allocation5] sm:$0x1] %v70_v10  ;;  %v73_v12 = vcvt.f32.s32 %v72_v11 }
  0x2a   :  { %112 = shalt.err (!%p109_p12)
}
  0x2b   :  { %s113_s5 = scalar_lea.hbm %s223_s2, 16 }
  0x2c   :  { %p114_p13 = scmp.ne.s32.totalorder %s223_s2, %s113_s5  ;;  %p117_p0 = scmp.lt.u32.totalorder %s113_s5, %s223_s2 }
  0x2e   :  { %p119_p1 = pnand %p117_p0, %p114_p13 }
  0x30   :  { %122 = shalt.err (!%p119_p1)
}
  0x31   :  { %50 = dma.vmem_to_hbm [thread:$0]  %s48_s27, 16, %s223_s2, [#allocation4]   ;;  %40 = vst [vmem:[#allocation6] sm:$0x1] %v73_v12 }
  0x32   :  { %s123_s12 = scalar_lea.vmem %s189_s0, 16  ;;  %s127_s13 = scalar_lea.vmem %s189_s0, 32 }
  0x33   :  { %p124_p2 = scmp.ne.s32.totalorder %s189_s0, %s123_s12  ;;  %p128_p3 = scmp.lt.s32.totalorder %s189_s0, %s189_s0 }
  0x34   :  { %p129_p4 = scmp.lt.s32.totalorder %s127_s13, %s123_s12 }
  0x36   :  { %p130_p5 = por %p129_p4, %p128_p3 }
  0x38   :  { %p131_p6 = pnand %p130_p5, %p124_p2 }
  0x3a   :  { %134 = shalt.err (!%p131_p6)
}
  0x3b   :  { %s135_s16 = scalar_lea.hbm %s224_s3, 16 }
  0x3c   :  { %p136_p7 = scmp.ne.s32.totalorder %s224_s3, %s135_s16  ;;  %p139_p8 = scmp.lt.u32.totalorder %s135_s16, %s224_s3 }
  0x3e   :  { %p141_p9 = pnand %p139_p8, %p136_p7 }
  0x40   :  { %144 = shalt.err (!%p141_p9)
}
  0x41   :  { %60 = dma.vmem_to_hbm [thread:$0]  %s189_s0, 16, %s224_s3, [#allocation7]  }
  0x42   :  { %147 = dma.done.wait [#allocation4], 16  }
  0x43   :  { %148 = vsyncadd [#allocation4], 4294967280 }
  0x44   :  { %149 = dma.done.wait [#allocation7], 16  }
  0x45   :  { %150 = vsyncadd [#allocation7], 4294967280 }
  0x46   :  { %67 = vsyncpa [#allocation3], 1 }
  0x47   :  { %68 = vsyncpa [#allocation4], 1 }
  0x48   :  { %69 = vsyncpa [#allocation7], 1 }

</bundles_post_ra>
